<compile_context>
chip_gen: v5e
topology: v5e:2x2
jax: 0.10.0
libtpu: 0.0.40
codegen_flags: <defaults>
</compile_context>

<pallas_src>
import jax
import jax.numpy as jnp
from jax.experimental import pallas as pl
from jax.experimental.pallas import tpu as pltpu


# ----------------------------------------------------------------------------
# Pallas kernels: fused (matmul + BN affine + optional residual + masked ReLU)
# ----------------------------------------------------------------------------

def _conv_matmul_kernel(a_ref, b_ref, scale_ref, shift_ref, rmask_ref, o_ref):
    acc = jnp.dot(a_ref[...], b_ref[...], preferred_element_type=jnp.float32)
    out = acc * scale_ref[...] + shift_ref[...]
    out = jnp.where(rmask_ref[...] != 0, jnp.maximum(out, 0.0), out)
    o_ref[...] = out.astype(o_ref.dtype)


def _conv_matmul_res_kernel(a_ref, b_ref, scale_ref, shift_ref, rmask_ref,
                            res_ref, o_ref):
    acc = jnp.dot(a_ref[...], b_ref[...], preferred_element_type=jnp.float32)
    out = acc * scale_ref[...] + shift_ref[...] + res_ref[...].astype(jnp.float32)
    out = jnp.where(rmask_ref[...] != 0, jnp.maximum(out, 0.0), out)
    o_ref[...] = out.astype(o_ref.dtype)


def _round_up(x, m):
    return (x + m - 1) // m * m


def matmul_fused(a, b, scale, shift, relu_mask, residual=None,
                 out_dtype=jnp.bfloat16):
    """(M,K) @ (K,N) * scale[N] + shift[N] (+ residual[M,N]) with per-channel
    ReLU mask. bf16 MXU inputs, f32 accumulation, single full-K block."""
    M, K = a.shape
    K2, N = b.shape
    assert K == K2
    a = a.astype(jnp.bfloat16)
    b = b.astype(jnp.bfloat16)

    # Pad only M (to sublane multiple / TM multiple); K and N stay unpadded
    # because the blocks span the full K / N dims.
    Mp = _round_up(M, 8)
    TM = min(128, Mp)
    Mp = _round_up(Mp, TM)
    if Mp != M:
        a = jnp.pad(a, ((0, Mp - M), (0, 0)))

    s = scale.reshape(1, N).astype(jnp.float32)
    h = shift.reshape(1, N).astype(jnp.float32)
    rm = relu_mask.reshape(1, N).astype(jnp.float32)

    a_spec = pl.BlockSpec((TM, K), lambda i: (i, 0))
    b_spec = pl.BlockSpec((K, N), lambda i: (0, 0))     # resident across M tiles
    vec_spec = pl.BlockSpec((1, N), lambda i: (0, 0))
    out_spec = pl.BlockSpec((TM, N), lambda i: (i, 0))

    if residual is None:
        kernel = _conv_matmul_kernel
        in_specs = [a_spec, b_spec, vec_spec, vec_spec, vec_spec]
        args = (a, b, s, h, rm)
    else:
        residual = residual.astype(jnp.bfloat16)
        if Mp != M:
            residual = jnp.pad(residual, ((0, Mp - M), (0, 0)))
        kernel = _conv_matmul_res_kernel
        in_specs = [a_spec, b_spec, vec_spec, vec_spec, vec_spec,
                    pl.BlockSpec((TM, N), lambda i: (i, 0))]
        args = (a, b, s, h, rm, residual)

    out = pl.pallas_call(
        kernel,
        out_shape=jax.ShapeDtypeStruct((Mp, N), out_dtype),
        grid_spec=pltpu.PrefetchScalarGridSpec(
            num_scalar_prefetch=0,
            grid=(Mp // TM,),
            in_specs=in_specs,
            out_specs=out_spec,
        ),
        compiler_params=pltpu.CompilerParams(
            dimension_semantics=("parallel",)),
    )(*args)
    if Mp != M:
        out = out[:M]
    return out


# ----------------------------------------------------------------------------
# Conv = im2col (glue, bf16) + fused Pallas matmul
# ----------------------------------------------------------------------------

def conv_bn(x_nhwc, w, scale, shift, relu_mask, stride=1, residual=None,
            out_dtype=jnp.bfloat16):
    """x: (N,H,W,Cin), w: (kh,kw,Cin,Cout), 'same'-style padding = kh//2."""
    kh, kw, cin, cout = w.shape
    pad = kh // 2
    N, H, W, C = x_nhwc.shape
    x = x_nhwc.astype(jnp.bfloat16)
    if kh == 1 and kw == 1 and stride == 1:
        Ho, Wo = H, W
        patches = x.reshape(N * H * W, C)
    else:
        xp = jnp.pad(x, ((0, 0), (pad, pad), (pad, pad), (0, 0)))
        Ho = (H + 2 * pad - kh) // stride + 1
        Wo = (W + 2 * pad - kw) // stride + 1
        cols = [xp[:, di:di + Ho * stride:stride, dj:dj + Wo * stride:stride, :]
                for di in range(kh) for dj in range(kw)]
        patches = jnp.concatenate(cols, axis=-1).reshape(
            N * Ho * Wo, kh * kw * cin)
    wmat = w.reshape(kh * kw * cin, cout).astype(jnp.bfloat16)
    out = matmul_fused(patches, wmat, scale, shift, relu_mask,
                       residual=residual, out_dtype=out_dtype)
    return out.reshape(N, Ho, Wo, cout)


# ----------------------------------------------------------------------------
# Parameter initialization (deterministic, in-script)
# ----------------------------------------------------------------------------

def init_conv(key, kh, kw, cin, cout):
    k1, k2, k3 = jax.random.split(key, 3)
    w = jax.random.normal(k1, (kh, kw, cin, cout), jnp.float32) / jnp.sqrt(
        float(kh * kw * cin))
    # BN folded into affine scale/shift.
    scale = 1.0 + 0.1 * jax.random.normal(k2, (cout,), jnp.float32)
    shift = 0.1 * jax.random.normal(k3, (cout,), jnp.float32)
    return dict(w=w, scale=scale, shift=shift)


def init_params(key):
    keys = iter(jax.random.split(key, 64))
    p = {}
    # --- ResNet backbone (BasicBlocks) ---
    p['stem'] = init_conv(next(keys), 3, 3, 3, 16)          # stride 2
    stage_cfg = [(16, 16, 1), (16, 32, 2), (32, 64, 2), (64, 64, 2)]
    p['stages'] = []
    for cin, cout, stride in stage_cfg:
        blk = {
            'conv1': init_conv(next(keys), 3, 3, cin, cout),
            'conv2': init_conv(next(keys), 3, 3, cout, cout),
        }
        if stride != 1 or cin != cout:
            blk['down'] = init_conv(next(keys), 1, 1, cin, cout)
        blk['stride'] = stride
        p['stages'].append(blk)
    # --- FPN neck ---
    fpn_ch = 32
    p['lateral'] = []
    for cin in [16, 32, 64, 64]:
        lp = init_conv(next(keys), 1, 1, cin, fpn_ch)
        lp['scale'] = jnp.ones((fpn_ch,), jnp.float32)       # plain 1x1 conv + bias
        p['lateral'].append(lp)
    p['fpn_out'] = [init_conv(next(keys), 3, 3, fpn_ch, fpn_ch) for _ in range(4)]
    for op in p['fpn_out']:
        op['scale'] = jnp.ones((fpn_ch,), jnp.float32)        # plain 3x3 conv + bias
    return p


# ----------------------------------------------------------------------------
# Backbone / Neck / Module forward
# ----------------------------------------------------------------------------

def basic_block(x, p):
    stride = p['stride']
    cout = p['conv1']['w'].shape[3]
    if 'down' in p:
        # Fuse conv1 (3x3) with the downsample 1x1 conv (embedded as a 3x3 with
        # only the center tap) -> one shared im2col, one matmul, 2*cout columns.
        w1 = p['conv1']['w']
        cin = w1.shape[2]
        wd = jnp.zeros((3, 3, cin, cout), w1.dtype).at[1, 1].set(
            p['down']['w'][0, 0])
        w = jnp.concatenate([w1, wd], axis=-1)
        scale = jnp.concatenate([p['conv1']['scale'], p['down']['scale']])
        shift = jnp.concatenate([p['conv1']['shift'], p['down']['shift']])
        rmask = jnp.concatenate([jnp.ones((cout,), jnp.float32),
                                 jnp.zeros((cout,), jnp.float32)])
        both = conv_bn(x, w, scale, shift, rmask, stride=stride)
        out1 = both[..., :cout]
        idn = both[..., cout:]
    else:
        out1 = conv_bn(x, p['conv1']['w'], p['conv1']['scale'],
                       p['conv1']['shift'], jnp.ones((cout,), jnp.float32),
                       stride=stride)
        idn = x
    N, Ho, Wo, C = out1.shape
    res = idn.reshape(N * Ho * Wo, C)
    # conv2 with fused BN + residual add + ReLU epilogue.
    y = conv_bn(out1, p['conv2']['w'], p['conv2']['scale'], p['conv2']['shift'],
                jnp.ones((C,), jnp.float32), stride=1, residual=res)
    return y


def resnet_backbone(x_nhwc, p):
    x = conv_bn(x_nhwc, p['stem']['w'], p['stem']['scale'], p['stem']['shift'],
                jnp.ones((p['stem']['w'].shape[3],), jnp.float32), stride=2)
    feats = []
    for blk in p['stages']:
        x = basic_block(x, blk)
        feats.append(x)
    return feats  # [C2, C3, C4, C5] (NHWC, bf16)


def fpn_neck(feats, p):
    n_levels = len(feats)
    fpn_ch = p['lateral'][0]['w'].shape[-1]
    no_relu = jnp.zeros((fpn_ch,), jnp.float32)
    laterals = [None] * n_levels
    # Top-down pathway: the nearest-neighbor-upsampled coarser lateral is added
    # inside the 1x1-conv matmul epilogue (no separate add kernel).
    for i in range(n_levels - 1, -1, -1):
        f = feats[i]
        Nb, H, W, _ = f.shape
        lp = p['lateral'][i]
        if i == n_levels - 1:
            res = None
        else:
            up = jnp.repeat(jnp.repeat(laterals[i + 1], 2, axis=1), 2, axis=2)
            res = up.reshape(Nb * H * W, fpn_ch)
        laterals[i] = conv_bn(f, lp['w'], lp['scale'], lp['shift'], no_relu,
                              stride=1, residual=res)
    outs = []
    for lat, op in zip(laterals, p['fpn_out']):
        outs.append(conv_bn(lat, op['w'], op['scale'], op['shift'], no_relu,
                            stride=1, out_dtype=jnp.float32))
    return outs  # [P2, P3, P4, P5] (NHWC, f32)


def img_extraction_forward(batch_dict, params):
    """Mirrors ImgExtraction.forward: images -> backbone -> neck -> img_feats."""
    images = batch_dict['images']                       # (N, 3, H, W) NCHW
    x_nhwc = jnp.transpose(images, (0, 2, 3, 1))        # -> NHWC internally
    feats = resnet_backbone(x_nhwc, params)
    feats = fpn_neck(feats, params)
    # back to NCHW to match PyTorch output convention
    batch_dict['img_feats'] = [jnp.transpose(f, (0, 3, 1, 2)) for f in feats]
    return batch_dict


# ----------------------------------------------------------------------------
# Main
# ----------------------------------------------------------------------------

if __name__ == "__main__":
    key = jax.random.PRNGKey(0)
    pkey, ikey = jax.random.split(key)
    params = init_params(pkey)

    images = jax.random.normal(ikey, (2, 3, 32, 32), jnp.float32)  # (N,3,H,W)
    batch_dict = {'images': images}

    batch_dict = img_extraction_forward(batch_dict, params)
    feats = batch_dict['img_feats']
    for f in feats:
        jax.block_until_ready(f)

    # sanity: expected multi-scale shapes and finite values
    expected = [(2, 32, 16, 16), (2, 32, 8, 8), (2, 32, 4, 4), (2, 32, 2, 2)]
    assert [tuple(f.shape) for f in feats] == expected, [f.shape for f in feats]
    assert all(bool(jnp.all(jnp.isfinite(f))) for f in feats)

    print("KERNEL_OK")
</pallas_src>

<mosaic_0001>
module attributes {stable_mosaic.version = 11 : i64} {
  func.func @_conv_matmul_kernel(%arg0: i32, %arg1: memref<128x27xbf16, #tpu.memory_space<vmem>>, %arg2: memref<27x16xbf16, #tpu.memory_space<vmem>>, %arg3: memref<1x16xf32, #tpu.memory_space<vmem>>, %arg4: memref<1x16xf32, #tpu.memory_space<vmem>>, %arg5: memref<1x16xf32, #tpu.memory_space<vmem>>, %arg6: memref<128x16xbf16, #tpu.memory_space<vmem>>) attributes {dimension_semantics = [#tpu.dimension_semantics<parallel>], iteration_bounds = array<i64: 4>, scalar_prefetch = 0 : i64, scratch_operands = 0 : i64, tpu.core_type = #tpu.core_type<tc>, window_params = [{transform_indices = @transform_0, window_bounds = array<i64: 128, 27>}, {pipeline_mode = #tpu.pipeline_mode<synchronous>, transform_indices = @transform_1, window_bounds = array<i64: 27, 16>}, {pipeline_mode = #tpu.pipeline_mode<synchronous>, transform_indices = @transform_2, window_bounds = array<i64: 1, 16>}, {pipeline_mode = #tpu.pipeline_mode<synchronous>, transform_indices = @transform_3, window_bounds = array<i64: 1, 16>}, {pipeline_mode = #tpu.pipeline_mode<synchronous>, transform_indices = @transform_4, window_bounds = array<i64: 1, 16>}, {transform_indices = @transform_5, window_bounds = array<i64: 128, 16>}]} {
    %c0 = arith.constant 0 : index
    %c0_0 = arith.constant 0 : index
    %0 = vector.load %arg1[%c0, %c0_0] : memref<128x27xbf16, #tpu.memory_space<vmem>>, vector<128x27xbf16>
    %c0_1 = arith.constant 0 : index
    %c0_2 = arith.constant 0 : index
    %1 = vector.load %arg2[%c0_1, %c0_2] : memref<27x16xbf16, #tpu.memory_space<vmem>>, vector<27x16xbf16>
    %cst = arith.constant dense<0.000000e+00> : vector<128x16xf32>
    %2 = tpu.matmul %0, %1, %cst {dimension_numbers = #tpu.dot_dimension_numbers<[1], [0], [0], [1], [0, 0, 1, 1], [], []>} : vector<128x27xbf16>, vector<27x16xbf16>, vector<128x16xf32> -> vector<128x16xf32>
    %c0_3 = arith.constant 0 : index
    %c0_4 = arith.constant 0 : index
    %3 = vector.load %arg3[%c0_3, %c0_4] : memref<1x16xf32, #tpu.memory_space<vmem>>, vector<1x16xf32>
    %4 = vector.broadcast %3 : vector<1x16xf32> to vector<128x16xf32>
    %5 = arith.mulf %2, %4 : vector<128x16xf32>
    %c0_5 = arith.constant 0 : index
    %c0_6 = arith.constant 0 : index
    %6 = vector.load %arg4[%c0_5, %c0_6] : memref<1x16xf32, #tpu.memory_space<vmem>>, vector<1x16xf32>
    %7 = vector.broadcast %6 : vector<1x16xf32> to vector<128x16xf32>
    %8 = arith.addf %5, %7 : vector<128x16xf32>
    %c0_7 = arith.constant 0 : index
    %c0_8 = arith.constant 0 : index
    %9 = vector.load %arg5[%c0_7, %c0_8] : memref<1x16xf32, #tpu.memory_space<vmem>>, vector<1x16xf32>
    %cst_9 = arith.constant 0.000000e+00 : f32
    %10 = vector.broadcast %cst_9 : f32 to vector<1x16xf32>
    %11 = arith.cmpf one, %9, %10 : vector<1x16xf32>
    %cst_10 = arith.constant 0.000000e+00 : f32
    %12 = vector.broadcast %cst_10 : f32 to vector<128x16xf32>
    %13 = arith.maximumf %8, %12 : vector<128x16xf32>
    %14 = vector.shape_cast %11 : vector<1x16xi1> to vector<1x16xi1>
    %15 = vector.broadcast %14 : vector<1x16xi1> to vector<128x16xi1>
    %16 = arith.select %15, %13, %8 : vector<128x16xi1>, vector<128x16xf32>
    %17 = arith.truncf %16 : vector<128x16xf32> to vector<128x16xbf16>
    %c0_11 = arith.constant 0 : index
    %c0_12 = arith.constant 0 : index
    %18 = vector.load %arg6[%c0_11, %c0_12] : memref<128x16xbf16, #tpu.memory_space<vmem>>, vector<128x16xbf16>
    tpu.vector_store %arg6[%c0_11, %c0_12], %17 {strides = array<i32>} : memref<128x16xbf16, #tpu.memory_space<vmem>>, vector<128x16xbf16>,
    return
  }
  func.func @transform_0(%arg0: i32) -> (i32, i32) {
    %c0_i32 = arith.constant 0 : i32
    %c0_i32_0 = arith.constant 0 : i32
    return %arg0, %c0_i32 : i32, i32
  }
  func.func @transform_1(%arg0: i32) -> (i32, i32) {
    %c0_i32 = arith.constant 0 : i32
    %c0_i32_0 = arith.constant 0 : i32
    %c0_i32_1 = arith.constant 0 : i32
    return %c0_i32, %c0_i32_0 : i32, i32
  }
  func.func @transform_2(%arg0: i32) -> (i32, i32) {
    %c0_i32 = arith.constant 0 : i32
    %c0_i32_0 = arith.constant 0 : i32
    %c0_i32_1 = arith.constant 0 : i32
    return %c0_i32, %c0_i32_0 : i32, i32
  }
  func.func @transform_3(%arg0: i32) -> (i32, i32) {
    %c0_i32 = arith.constant 0 : i32
    %c0_i32_0 = arith.constant 0 : i32
    %c0_i32_1 = arith.constant 0 : i32
    return %c0_i32, %c0_i32_0 : i32, i32
  }
  func.func @transform_4(%arg0: i32) -> (i32, i32) {
    %c0_i32 = arith.constant 0 : i32
    %c0_i32_0 = arith.constant 0 : i32
    %c0_i32_1 = arith.constant 0 : i32
    return %c0_i32, %c0_i32_0 : i32, i32
  }
  func.func @transform_5(%arg0: i32) -> (i32, i32) {
    %c0_i32 = arith.constant 0 : i32
    %c0_i32_0 = arith.constant 0 : i32
    return %arg0, %c0_i32 : i32, i32
  }
}

</mosaic_0001>

<bundles_post_ra>
// kernel: tpu_custom_call.1
= control target key start
LH: loop header
LB: loop body
LE: loop exit
PB: predicated region body
PF: predicated region fallthrough
CT: control target
= control target key end

     0   :  { %s674_s18 = smov 0   ;;  %s830_s0 = inlined_call_operand.vmem [shape: bf16[512,27], index: 0, kind: input, shape index: {}]   ;;  %s831_s1 = inlined_call_operand.vmem [shape: bf16[27,16], index: 1, kind: input, shape index: {}]   ;;  %s832_s2 = inlined_call_operand.vmem [shape: f32[1,16], index: 2, kind: input, shape index: {}]   ;;  %s833_s3 = inlined_call_operand.vmem [shape: f32[1,16], index: 3, kind: input, shape index: {}]   ;;  %s834_s4 = inlined_call_operand.vmem [shape: f32[1,16], index: 4, kind: input, shape index: {}]   ;;  %s835_s5 = inlined_call_operand.vmem [shape: bf16[512,16], index: 5, kind: output, shape index: {}]  }
   0x1 LB: > { %s547_s19 = sadd.s32 4294967295, %s640_s18   ;;  %p551_p0 = scmp.ge.s32.totalorder %s640_s18, 1  ;;  %s640_s18 = sphi %s674_s18, %s15_s18  }
   0x2   : > { %p188_p1 = scmp.lt.s32.totalorder %s640_s18, 5 }
   0x4   : > { %p189_p2 = pnand %p551_p0, %p188_p1 }
   0x5   : > { %s552_s24 = sshll.u32 (!%p189_p2), %s547_s19, 4 }
   0x6   : > { %192 = sbr.rel (%p189_p2) target bundleno = 192 (0xc0), region = 40  ;;  %p217_p3 = scmp.lt.s32.totalorder (!%p189_p2), %s552_s24, 63 }
   0xb   : > { %v594_v0 = vld [vmem:[%s831_s1 + $0x8] sm:$0xf]  ;;  %v615_v1 = vld [vmem:[%s831_s1 + $0x8] sm:$0x30]  ;;  %vm325_vm0 = vcmask 1044480   ;;  %vm326_vm1 = vcmask 1045504  }
   0xc   : > { %v595_v2 = vor.u32 %v615_v1, %v594_v0  ;;  %v642_v3 = vmov 65535   ;;  %s839_s24 = smov (!%p217_p3, %s552_s24), 63  ;;  %v614_v7 = vld [vmem:[%s831_s1] sm:$0xff]  ;;  %vm300_vm2 = vcmask 220160   ;;  %v643_v18 = vmov 0  }
   0xd   : > { %v327_v4 = vsel %vm325_vm0, 4294967295, %v642_v3  ;;  %s553_s27 = sshll.u32 %s839_s24, 2  ;;  %v421_v16 = vld [vmem:[%s834_s4] sm:$0x1]  ;;  %vm474_vm5 = vcmask 125952  }
   0xe   : > { %v328_v5 = vsel %vm326_vm1, %v327_v4, 0  ;;  %s220_s30 = scalar_lea.vmem %s830_s0, %s553_s27  ;;  %vm422_vm3 = vcmp.ne.f32.partialorder %v421_v16, 0.0  ;;  %v713_v17 = vld [vmem:[%s832_s2] ss:$0 sm:$0xff]  ;;  %s733_s14 = scalar_lea.vmem %s835_s5, %s553_s27 }
   0xf   : > { %v330_v6 = vand.u32 %v595_v2, %v328_v5  ;;  %v606_v8 = vld [vmem:[%s220_s30] sm:$0xff]  ;;  %v608_v9 = vld [vmem:[%s220_s30 + $0x10] sm:$0xff]  ;;  %v607_v12 = vld [vmem:[%s220_s30 + $0x8] sm:$0xff]  ;;  %v439_v19 = vsel %vm422_vm3, 1, %v643_v18 }
  0x10   : > { %v610_v10 = vld [vmem:[%s220_s30 + $0x20] sm:$0xff]  ;;  %v612_v11 = vld [vmem:[%s220_s30 + $0x30] sm:$0xff]  ;;  %v609_v13 = vld [vmem:[%s220_s30 + $0x18] sm:$0xff]  ;;  %v440_v22 = vperm.slane %v439_v19, 0 }
  0x11   : > { %338 = vmatpush.bf16.msra.mxu0 %v330_v6  ;;  %616 = vmatpush.bf16.msra.mxu1 %v330_v6  ;;  %v611_v14 = vld [vmem:[%s220_s30 + $0x28] sm:$0xff]  ;;  %v613_v15 = vld [vmem:[%s220_s30 + $0x38] sm:$0xff]  ;;  %v718_v20 = vld [vmem:[%s833_s3] ss:$0 sm:$0xff] }
  0x12   : > { %617 = vmatpush.bf16.msra.mxu2 %v330_v6  ;;  %618 = vmatpush.bf16.msra.mxu3 %v330_v6  ;;  %vm724_vm4 = vcmp.eq.s32.totalorder %v440_v22, 1 }
  0x15   : > { %339 = vmatpush.bf16.msra.mxu0 %v614_v7  ;;  %619 = vmatpush.bf16.msra.mxu1 %v614_v7 }
  0x16   : > { %620 = vmatpush.bf16.msra.mxu2 %v614_v7  ;;  %621 = vmatpush.bf16.msra.mxu3 %v614_v7 }
  0x18   : > { %596 = vmatmul.msk.bf16.vlgmr.msra.gmra.mxu0 %vm300_vm2, %v606_v8  ;;  %598 = vmatmul.msk.bf16.vlgmr.msra.gmra.mxu1 %vm300_vm2, %v608_v9 }
  0x19   : > { %600 = vmatmul.msk.bf16.vlgmr.msra.gmra.mxu2 %vm300_vm2, %v610_v10  ;;  %602 = vmatmul.msk.bf16.vlgmr.msra.gmra.mxu3 %vm300_vm2, %v612_v11 }
  0x28   : > { %597 = vmatmul.msk.bf16.gmra.mxu0 %vm300_vm2, %v607_v12  ;;  %599 = vmatmul.msk.bf16.gmra.mxu1 %vm300_vm2, %v609_v13 }
  0x29   : > { %601 = vmatmul.msk.bf16.gmra.mxu2 %vm300_vm2, %v611_v14  ;;  %603 = vmatmul.msk.bf16.gmra.mxu3 %vm300_vm2, %v613_v15 }
  0x95   : > { %v341_v21 = vpop.f32.mrf.mxu0  ;;  %v351_v23 = vpop.f32.mrf.mxu1 }
  0x96   : > { %v385_v24 = vmul.f32 %v713_v17, %v341_v21  ;;  %v389_v25 = vmul.f32 %v713_v17, %v351_v23 }
  0x98   : > { %v405_v26 = vadd.f32 %v718_v20, %v385_v24  ;;  %v409_v27 = vadd.f32 %v718_v20, %v389_v25 }
  0x9a   : > { %v423_v29 = vmax.f32 %v405_v26, 0.0  ;;  %v427_v30 = vmax.f32 %v409_v27, 0.0 }
  0x9c   : > { %v442_v31 = vsel %vm724_vm4, %v423_v29, %v405_v26  ;;  %v446_v32 = vsel %vm724_vm4, %v427_v30, %v409_v27  ;;  %v361_v33 = vpop.f32.mrf.mxu2  ;;  %v371_v34 = vpop.f32.mrf.mxu3 }
  0x9d   : > { %v458_v35 = vpack.c.bf16 %v442_v31, %v442_v31  ;;  %v462_v36 = vpack.c.bf16 %v446_v32, %v446_v32  ;;  %v393_v37 = vmul.f32 %v713_v17, %v361_v33  ;;  %v397_v38 = vmul.f32 %v713_v17, %v371_v34  ;;  %v343_v39 = vpop.f32.mrf.mxu0  ;;  %v353_v40 = vpop.f32.mrf.mxu1 }
  0x9e   : > { %v386_v41 = vmul.f32 %v713_v17, %v343_v39  ;;  %v390_v42 = vmul.f32 %v713_v17, %v353_v40 }
  0x9f   : > { %475 = vst.msk [vmem:[%s733_s14] sm:$0xf] %vm474_vm5, %v458_v35  ;;  %v413_v43 = vadd.f32 %v718_v20, %v393_v37  ;;  %v417_v44 = vadd.f32 %v718_v20, %v397_v38 }
  0xa0   : > { %479 = vst.msk [vmem:[%s733_s14 + $0x10] sm:$0xf] %vm474_vm5, %v462_v36  ;;  %v406_v45 = vadd.f32 %v718_v20, %v386_v41  ;;  %v410_v46 = vadd.f32 %v718_v20, %v390_v42 }
  0xa1   : > { %v431_v47 = vmax.f32 %v413_v43, 0.0  ;;  %v435_v48 = vmax.f32 %v417_v44, 0.0 }
  0xa2   : > { %v424_v49 = vmax.f32 %v406_v45, 0.0  ;;  %v428_v50 = vmax.f32 %v410_v46, 0.0 }
  0xa3   : > { %v450_v51 = vsel %vm724_vm4, %v431_v47, %v413_v43  ;;  %v454_v52 = vsel %vm724_vm4, %v435_v48, %v417_v44 }
  0xa4   : > { %v466_v53 = vpack.c.bf16 %v450_v51, %v450_v51  ;;  %v470_v54 = vpack.c.bf16 %v454_v52, %v454_v52  ;;  %v443_v55 = vsel %vm724_vm4, %v424_v49, %v406_v45  ;;  %v447_v56 = vsel %vm724_vm4, %v428_v50, %v410_v46  ;;  %v363_v57 = vpop.f32.mrf.mxu2  ;;  %v373_v58 = vpop.f32.mrf.mxu3 }
  0xa5   : > { %v459_v59 = vpack.c.bf16 %v443_v55, %v443_v55  ;;  %v463_v60 = vpack.c.bf16 %v447_v56, %v447_v56  ;;  %v394_v61 = vmul.f32 %v713_v17, %v363_v57  ;;  %v398_v62 = vmul.f32 %v713_v17, %v373_v58  ;;  %v346_v63 = vpop.f32.mrf.mxu0  ;;  %v356_v0 = vpop.f32.mrf.mxu1 }
  0xa6   : > { %483 = vst.msk [vmem:[%s733_s14 + $0x20] sm:$0xf] %vm474_vm5, %v466_v53  ;;  %v387_v1 = vmul.f32 %v713_v17, %v346_v63  ;;  %v391_v2 = vmul.f32 %v713_v17, %v356_v0 }
  0xa7   : > { %487 = vst.msk [vmem:[%s733_s14 + $0x30] sm:$0xf] %vm474_vm5, %v470_v54  ;;  %v414_v3 = vadd.f32 %v718_v20, %v394_v61  ;;  %v418_v4 = vadd.f32 %v718_v20, %v398_v62 }
  0xa8   : > { %476 = vst.msk [vmem:[%s733_s14 + $0x4] sm:$0xf] %vm474_vm5, %v459_v59  ;;  %v407_v5 = vadd.f32 %v718_v20, %v387_v1  ;;  %v411_v6 = vadd.f32 %v718_v20, %v391_v2 }
  0xa9   : > { %480 = vst.msk [vmem:[%s733_s14 + $0x14] sm:$0xf] %vm474_vm5, %v463_v60  ;;  %v432_v7 = vmax.f32 %v414_v3, 0.0  ;;  %v436_v8 = vmax.f32 %v418_v4, 0.0 }
  0xaa   : > { %v425_v9 = vmax.f32 %v407_v5, 0.0  ;;  %v429_v10 = vmax.f32 %v411_v6, 0.0 }
  0xab   : > { %v451_v11 = vsel %vm724_vm4, %v432_v7, %v414_v3  ;;  %v455_v12 = vsel %vm724_vm4, %v436_v8, %v418_v4 }
  0xac   : > { %v467_v13 = vpack.c.bf16 %v451_v11, %v451_v11  ;;  %v471_v14 = vpack.c.bf16 %v455_v12, %v455_v12  ;;  %v444_v15 = vsel %vm724_vm4, %v425_v9, %v407_v5  ;;  %v448_v16 = vsel %vm724_vm4, %v429_v10, %v411_v6  ;;  %v366_v18 = vpop.f32.mrf.mxu2  ;;  %v376_v19 = vpop.f32.mrf.mxu3 }
  0xad   : > { %v460_v21 = vpack.c.bf16 %v444_v15, %v444_v15  ;;  %v464_v22 = vpack.c.bf16 %v448_v16, %v448_v16  ;;  %v395_v23 = vmul.f32 %v713_v17, %v366_v18  ;;  %v399_v24 = vmul.f32 %v713_v17, %v376_v19  ;;  %v348_v25 = vpop.f32.mrf.mxu0  ;;  %v358_v26 = vpop.f32.mrf.mxu1 }
  0xae   : > { %484 = vst.msk [vmem:[%s733_s14 + $0x24] sm:$0xf] %vm474_vm5, %v467_v13  ;;  %v388_v27 = vmul.f32 %v713_v17, %v348_v25  ;;  %v392_v29 = vmul.f32 %v713_v17, %v358_v26 }
  0xaf   : > { %488 = vst.msk [vmem:[%s733_s14 + $0x34] sm:$0xf] %vm474_vm5, %v471_v14  ;;  %v415_v30 = vadd.f32 %v718_v20, %v395_v23  ;;  %v419_v31 = vadd.f32 %v718_v20, %v399_v24 }
  0xb0   : > { %477 = vst.msk [vmem:[%s733_s14 + $0x8] sm:$0xf] %vm474_vm5, %v460_v21  ;;  %v408_v32 = vadd.f32 %v718_v20, %v388_v27  ;;  %v412_v33 = vadd.f32 %v718_v20, %v392_v29 }
  0xb1   : > { %481 = vst.msk [vmem:[%s733_s14 + $0x18] sm:$0xf] %vm474_vm5, %v464_v22  ;;  %v433_v34 = vmax.f32 %v415_v30, 0.0  ;;  %v437_v35 = vmax.f32 %v419_v31, 0.0 }
  0xb2   : > { %v426_v36 = vmax.f32 %v408_v32, 0.0  ;;  %v430_v37 = vmax.f32 %v412_v33, 0.0 }
  0xb3   : > { %v452_v38 = vsel %vm724_vm4, %v433_v34, %v415_v30  ;;  %v456_v39 = vsel %vm724_vm4, %v437_v35, %v419_v31 }
  0xb4   : > { %v468_v40 = vpack.c.bf16 %v452_v38, %v452_v38  ;;  %v472_v41 = vpack.c.bf16 %v456_v39, %v456_v39  ;;  %v445_v42 = vsel %vm724_vm4, %v426_v36, %v408_v32  ;;  %v449_v43 = vsel %vm724_vm4, %v430_v37, %v412_v33  ;;  %v368_v44 = vpop.f32.mrf.mxu2  ;;  %v378_v45 = vpop.f32.mrf.mxu3 }
  0xb5   : > { %v461_v46 = vpack.c.bf16 %v445_v42, %v445_v42  ;;  %v465_v47 = vpack.c.bf16 %v449_v43, %v449_v43  ;;  %v396_v48 = vmul.f32 %v713_v17, %v368_v44  ;;  %v400_v49 = vmul.f32 %v713_v17, %v378_v45 }
  0xb6   : > { %485 = vst.msk [vmem:[%s733_s14 + $0x28] sm:$0xf] %vm474_vm5, %v468_v40 }
  0xb7   : > { %489 = vst.msk [vmem:[%s733_s14 + $0x38] sm:$0xf] %vm474_vm5, %v472_v41  ;;  %v416_v50 = vadd.f32 %v718_v20, %v396_v48  ;;  %v420_v51 = vadd.f32 %v718_v20, %v400_v49 }
  0xb8   : > { %478 = vst.msk [vmem:[%s733_s14 + $0xc] sm:$0xf] %vm474_vm5, %v461_v46 }
  0xb9   : > { %482 = vst.msk [vmem:[%s733_s14 + $0x1c] sm:$0xf] %vm474_vm5, %v465_v47  ;;  %v434_v52 = vmax.f32 %v416_v50, 0.0  ;;  %v438_v53 = vmax.f32 %v420_v51, 0.0 }
  0xbb   : > { %v453_v54 = vsel %vm724_vm4, %v434_v52, %v416_v50  ;;  %v457_v17 = vsel %vm724_vm4, %v438_v53, %v420_v51 }
  0xbc   : > { %v469_v55 = vpack.c.bf16 %v453_v54, %v453_v54  ;;  %v473_v56 = vpack.c.bf16 %v457_v17, %v457_v17 }
  0xbe   : > { %486 = vst.msk [vmem:[%s733_s14 + $0x2c] sm:$0xf] %vm474_vm5, %v469_v55 }
  0xbf   : > { %490 = vst.msk [vmem:[%s733_s14 + $0x3c] sm:$0xf] %vm474_vm5, %v473_v56 }
  0xc0 PF: > { %s15_s18 = sadd.s32 1, %s640_s18  }
  0xc1   : > { %p12_p4 = scmp.ge.s32.totalorder %s15_s18, 6  }
  0xc3   :  { %14 = sbr.rel (!%p12_p4) target bundleno = 1 (0x1), region = 70 }

</bundles_post_ra>
